<compile_context>
chip_gen: v7x
topology: tpu7x:2x2x1
jax: 0.10.0
libtpu: 0.0.40
codegen_flags: <defaults>
</compile_context>

<pallas_src>
import jax
import jax.numpy as jnp
from jax.experimental import pallas as pl
from jax.experimental.pallas import tpu as pltpu

LANE = 128
SUBLANE = 8


def _round_up(x, m):
    return ((x + m - 1) // m) * m


def mlp_kernel(ids_ref, emb_ref, w1_ref, b1_ref, w2_ref, b2_ref, o_ref):
    """One grid step = tb rows of the batch.

    ids_ref : VMEM int32 [tb, 1]    entity ids for this batch tile
    emb_ref : VMEM bf16 [Nep, Ep]   zero-padded entity table (grid-invariant)
    w1_ref  : VMEM bf16 [Ep, Hp]
    b1_ref  : VMEM f32  [1,  Hp]
    w2_ref  : VMEM bf16 [Hp, Op]
    b2_ref  : VMEM f32  [1,  Op]
    o_ref   : VMEM f32  [tb, Op]    lane-dense output slab
    """
    ids = ids_ref[...]                                          # [tb, 1] int32
    tb = ids.shape[0]
    nep = emb_ref.shape[0]

    # --- embedding lookup as an exact one-hot MXU gather (no per-row DMAs) ---
    ent = jax.lax.broadcasted_iota(jnp.int32, (tb, nep), 1)     # [tb, Nep]
    onehot = jnp.where(ent == ids, 1.0, 0.0).astype(jnp.bfloat16)
    x = jnp.dot(onehot, emb_ref[...],
                preferred_element_type=jnp.float32)             # [tb, Ep] == emb rows
    x = x.astype(jnp.bfloat16)                                  # exact (0/1 selection)

    # --- classifier: bf16 MXU inputs, f32 accumulation / epilogue ---
    h = jnp.tanh(
        jnp.dot(x, w1_ref[...], preferred_element_type=jnp.float32) + b1_ref[...]
    )                                                           # [tb, Hp] f32
    out = (
        jnp.dot(h.astype(jnp.bfloat16), w2_ref[...],
                preferred_element_type=jnp.float32)
        + b2_ref[...]
    )                                                           # [tb, Op] f32
    o_ref[...] = out.astype(o_ref.dtype)


def prepare_baseline_mlp_params(entity_embeds, w1, b1, w2, b2):
    """One-time padding / bf16 casting of the static operands.

    Hoisted out of the per-call forward path (per review): these pads/casts are
    pure XLA ops that would otherwise run on every forward.
    """
    Ne, E = entity_embeds.shape
    H = w1.shape[1]
    O = w2.shape[1]
    Nep = _round_up(Ne, LANE)   # lane-dense one-hot contraction dim
    Ep = _round_up(E, LANE)     # lane-dense matmul LHS
    Hp = _round_up(H, LANE)
    Op = _round_up(O, LANE)

    emb_p = jnp.zeros((Nep, Ep), jnp.bfloat16).at[:Ne, :E].set(
        entity_embeds.astype(jnp.bfloat16))
    w1p = jnp.zeros((Ep, Hp), jnp.bfloat16).at[:E, :H].set(w1.astype(jnp.bfloat16))
    b1p = jnp.zeros((1, Hp), jnp.float32).at[:, :H].set(
        b1.reshape(1, H).astype(jnp.float32))
    w2p = jnp.zeros((Hp, Op), jnp.bfloat16).at[:H, :O].set(w2.astype(jnp.bfloat16))
    b2p = jnp.zeros((1, Op), jnp.float32).at[:, :O].set(
        b2.reshape(1, O).astype(jnp.float32))
    return dict(emb=emb_p, w1=w1p, b1=b1p, w2=w2p, b2=b2p,
                num_entities=Ne, E=E, H=H, O=O)


def baseline_mlp_forward(batch_ids, params, *, tb=None):
    """Equivalent of BaselineMLP.forward(batch) on prepared (padded) params."""
    B = batch_ids.shape[0]
    emb = params["emb"]
    w1p, b1p, w2p, b2p = params["w1"], params["b1"], params["w2"], params["b2"]
    O = params["O"]
    Nep, Ep = emb.shape
    Hp = w1p.shape[1]
    Op = w2p.shape[1]

    # Batch tile: multiple of 8 sublanes, big enough to amortize per-step
    # overhead, capped so there are >= 2 tiles whenever B allows it (v7x has
    # two TensorCores that split the "parallel" grid axis).
    B8 = _round_up(B, SUBLANE)
    if tb is None:
        tb = min(512, B8)
        if B8 >= 2 * SUBLANE:
            tb = min(tb, _round_up(B8 // 2, SUBLANE))
    Bp = _round_up(B, tb)

    ids = batch_ids.astype(jnp.int32).reshape(B, 1)
    if Bp != B:
        # Padded rows look up entity 0 and are sliced off below; never consumed.
        ids = jnp.pad(ids, ((0, Bp - B), (0, 0)))

    out = pl.pallas_call(
        mlp_kernel,
        out_shape=jax.ShapeDtypeStruct((Bp, Op), jnp.float32),
        grid=(Bp // tb,),
        in_specs=[
            pl.BlockSpec((tb, 1), lambda i: (i, 0)),       # ids tile
            pl.BlockSpec((Nep, Ep), lambda i: (0, 0)),     # entity table, VMEM resident
            pl.BlockSpec((Ep, Hp), lambda i: (0, 0)),      # W1 resident
            pl.BlockSpec((1, Hp), lambda i: (0, 0)),       # b1 resident
            pl.BlockSpec((Hp, Op), lambda i: (0, 0)),      # W2 resident
            pl.BlockSpec((1, Op), lambda i: (0, 0)),       # b2 resident
        ],
        out_specs=pl.BlockSpec((tb, Op), lambda i: (i, 0)),
        compiler_params=pltpu.CompilerParams(
            dimension_semantics=("parallel",),             # batch tiles independent
        ),
    )(ids, emb, w1p, b1p, w2p, b2p)

    return out[:B, :O]


if __name__ == "__main__":
    # Small synthetic configuration consistent with the module's __init__:
    #   embed: [num_entities, embed_size], Linear(E->H), Tanh, Linear(H->O)
    num_entities = 16
    embed_size = 32             # E
    classifier_hidden_dim = 64  # H
    classifier_output_dim = 8   # O
    batch = 8                   # B

    key = jax.random.PRNGKey(0)
    k_emb, k_w1, k_b1, k_w2, k_b2, k_ids = jax.random.split(key, 6)

    entity_embeds = jax.random.normal(k_emb, (num_entities, embed_size), jnp.float32)
    # nn.Linear stores weight as [out, in]; we keep the [in, out] transpose so the
    # kernel can do a plain row-major x @ W.
    w1 = jax.random.normal(k_w1, (embed_size, classifier_hidden_dim), jnp.float32) * 0.1
    b1 = jax.random.normal(k_b1, (1, classifier_hidden_dim), jnp.float32) * 0.1
    w2 = jax.random.normal(k_w2, (classifier_hidden_dim, classifier_output_dim), jnp.float32) * 0.1
    b2 = jax.random.normal(k_b2, (1, classifier_output_dim), jnp.float32) * 0.1

    batch_ids = jax.random.randint(k_ids, (batch,), 0, num_entities)

    params = prepare_baseline_mlp_params(entity_embeds, w1, b1, w2, b2)
    out = baseline_mlp_forward(batch_ids, params)
    out = jax.block_until_ready(out)

    # Reference 1: bf16-cast operands, f32 accumulation (same numerics as kernel).
    x_ref = jnp.take(entity_embeds, batch_ids, axis=0)
    h_ref = jnp.tanh(
        jnp.dot(x_ref.astype(jnp.bfloat16), w1.astype(jnp.bfloat16),
                preferred_element_type=jnp.float32) + b1)
    ref = jnp.dot(h_ref.astype(jnp.bfloat16), w2.astype(jnp.bfloat16),
                  preferred_element_type=jnp.float32) + b2
    # Reference 2: pure f32 (the PyTorch module's numerics; bf16 MXU inputs are a
    # deliberate, documented precision tradeoff).
    ref_f32 = jnp.tanh(x_ref @ w1 + b1) @ w2 + b2

    assert out.shape == (batch, classifier_output_dim)
    assert jnp.allclose(out, ref, atol=1e-2, rtol=1e-2)
    assert jnp.allclose(out, ref_f32, atol=5e-2, rtol=5e-2)

    print("KERNEL_OK")
</pallas_src>

<mosaic_0001>
module attributes {stable_mosaic.version = 11 : i64} {
  func.func @mlp_kernel(%arg0: i32, %arg1: memref<8x1xi32, #tpu.memory_space<vmem>>, %arg2: memref<128x128xbf16, #tpu.memory_space<vmem>>, %arg3: memref<128x128xbf16, #tpu.memory_space<vmem>>, %arg4: memref<1x128xf32, #tpu.memory_space<vmem>>, %arg5: memref<128x128xbf16, #tpu.memory_space<vmem>>, %arg6: memref<1x128xf32, #tpu.memory_space<vmem>>, %arg7: memref<8x128xf32, #tpu.memory_space<vmem>>) attributes {dimension_semantics = [#tpu.dimension_semantics<parallel>], iteration_bounds = array<i64: 1>, scalar_prefetch = 0 : i64, scratch_operands = 0 : i64, tpu.core_type = #tpu.core_type<tc>, window_params = [{transform_indices = @transform_0, window_bounds = array<i64: 8, 1>}, {pipeline_mode = #tpu.pipeline_mode<synchronous>, transform_indices = @transform_1, window_bounds = array<i64: 128, 128>}, {pipeline_mode = #tpu.pipeline_mode<synchronous>, transform_indices = @transform_2, window_bounds = array<i64: 128, 128>}, {pipeline_mode = #tpu.pipeline_mode<synchronous>, transform_indices = @transform_3, window_bounds = array<i64: 1, 128>}, {pipeline_mode = #tpu.pipeline_mode<synchronous>, transform_indices = @transform_4, window_bounds = array<i64: 128, 128>}, {pipeline_mode = #tpu.pipeline_mode<synchronous>, transform_indices = @transform_5, window_bounds = array<i64: 1, 128>}, {transform_indices = @transform_6, window_bounds = array<i64: 8, 128>}]} {
    %c0 = arith.constant 0 : index
    %c0_0 = arith.constant 0 : index
    %0 = vector.load %arg1[%c0, %c0_0] : memref<8x1xi32, #tpu.memory_space<vmem>>, vector<8x1xi32>
    %1 = tpu.iota {dimensions = array<i32: 1>} : vector<8x128xi32>
    %2 = vector.broadcast %0 : vector<8x1xi32> to vector<8x128xi32>
    %3 = arith.cmpi eq, %1, %2 : vector<8x128xi32>
    %cst = arith.constant 1.000000e+00 : f32
    %cst_1 = arith.constant 0.000000e+00 : f32
    %4 = vector.broadcast %cst : f32 to vector<8x128xf32>
    %5 = vector.broadcast %cst_1 : f32 to vector<8x128xf32>
    %6 = arith.select %3, %4, %5 : vector<8x128xi1>, vector<8x128xf32>
    %7 = arith.truncf %6 : vector<8x128xf32> to vector<8x128xbf16>
    %c0_2 = arith.constant 0 : index
    %c0_3 = arith.constant 0 : index
    %8 = vector.load %arg2[%c0_2, %c0_3] : memref<128x128xbf16, #tpu.memory_space<vmem>>, vector<128x128xbf16>
    %cst_4 = arith.constant dense<0.000000e+00> : vector<8x128xf32>
    %9 = tpu.matmul %7, %8, %cst_4 {dimension_numbers = #tpu.dot_dimension_numbers<[1], [0], [0], [1], [0, 0, 1, 1], [], []>} : vector<8x128xbf16>, vector<128x128xbf16>, vector<8x128xf32> -> vector<8x128xf32>
    %10 = arith.truncf %9 : vector<8x128xf32> to vector<8x128xbf16>
    %c0_5 = arith.constant 0 : index
    %c0_6 = arith.constant 0 : index
    %11 = vector.load %arg3[%c0_5, %c0_6] : memref<128x128xbf16, #tpu.memory_space<vmem>>, vector<128x128xbf16>
    %cst_7 = arith.constant dense<0.000000e+00> : vector<8x128xf32>
    %12 = tpu.matmul %10, %11, %cst_7 {dimension_numbers = #tpu.dot_dimension_numbers<[1], [0], [0], [1], [0, 0, 1, 1], [], []>} : vector<8x128xbf16>, vector<128x128xbf16>, vector<8x128xf32> -> vector<8x128xf32>
    %c0_8 = arith.constant 0 : index
    %c0_9 = arith.constant 0 : index
    %13 = vector.load %arg4[%c0_8, %c0_9] : memref<1x128xf32, #tpu.memory_space<vmem>>, vector<1x128xf32>
    %14 = vector.broadcast %13 : vector<1x128xf32> to vector<8x128xf32>
    %15 = arith.addf %12, %14 : vector<8x128xf32>
    %16 = math.tanh %15 : vector<8x128xf32>
    %17 = arith.truncf %16 : vector<8x128xf32> to vector<8x128xbf16>
    %c0_10 = arith.constant 0 : index
    %c0_11 = arith.constant 0 : index
    %18 = vector.load %arg5[%c0_10, %c0_11] : memref<128x128xbf16, #tpu.memory_space<vmem>>, vector<128x128xbf16>
    %cst_12 = arith.constant dense<0.000000e+00> : vector<8x128xf32>
    %19 = tpu.matmul %17, %18, %cst_12 {dimension_numbers = #tpu.dot_dimension_numbers<[1], [0], [0], [1], [0, 0, 1, 1], [], []>} : vector<8x128xbf16>, vector<128x128xbf16>, vector<8x128xf32> -> vector<8x128xf32>
    %c0_13 = arith.constant 0 : index
    %c0_14 = arith.constant 0 : index
    %20 = vector.load %arg6[%c0_13, %c0_14] : memref<1x128xf32, #tpu.memory_space<vmem>>, vector<1x128xf32>
    %21 = vector.broadcast %20 : vector<1x128xf32> to vector<8x128xf32>
    %22 = arith.addf %19, %21 : vector<8x128xf32>
    %c0_15 = arith.constant 0 : index
    %c0_16 = arith.constant 0 : index
    %23 = vector.load %arg7[%c0_15, %c0_16] : memref<8x128xf32, #tpu.memory_space<vmem>>, vector<8x128xf32>
    tpu.vector_store %arg7[%c0_15, %c0_16], %22 {strides = array<i32>} : memref<8x128xf32, #tpu.memory_space<vmem>>, vector<8x128xf32>,
    return
  }
  func.func @transform_0(%arg0: i32) -> (i32, i32) {
    %c0_i32 = arith.constant 0 : i32
    %c0_i32_0 = arith.constant 0 : i32
    return %arg0, %c0_i32 : i32, i32
  }
  func.func @transform_1(%arg0: i32) -> (i32, i32) {
    %c0_i32 = arith.constant 0 : i32
    %c0_i32_0 = arith.constant 0 : i32
    %c0_i32_1 = arith.constant 0 : i32
    return %c0_i32, %c0_i32_0 : i32, i32
  }
  func.func @transform_2(%arg0: i32) -> (i32, i32) {
    %c0_i32 = arith.constant 0 : i32
    %c0_i32_0 = arith.constant 0 : i32
    %c0_i32_1 = arith.constant 0 : i32
    return %c0_i32, %c0_i32_0 : i32, i32
  }
  func.func @transform_3(%arg0: i32) -> (i32, i32) {
    %c0_i32 = arith.constant 0 : i32
    %c0_i32_0 = arith.constant 0 : i32
    %c0_i32_1 = arith.constant 0 : i32
    return %c0_i32, %c0_i32_0 : i32, i32
  }
  func.func @transform_4(%arg0: i32) -> (i32, i32) {
    %c0_i32 = arith.constant 0 : i32
    %c0_i32_0 = arith.constant 0 : i32
    %c0_i32_1 = arith.constant 0 : i32
    return %c0_i32, %c0_i32_0 : i32, i32
  }
  func.func @transform_5(%arg0: i32) -> (i32, i32) {
    %c0_i32 = arith.constant 0 : i32
    %c0_i32_0 = arith.constant 0 : i32
    %c0_i32_1 = arith.constant 0 : i32
    return %c0_i32, %c0_i32_0 : i32, i32
  }
  func.func @transform_6(%arg0: i32) -> (i32, i32) {
    %c0_i32 = arith.constant 0 : i32
    %c0_i32_0 = arith.constant 0 : i32
    return %arg0, %c0_i32 : i32, i32
  }
}

</mosaic_0001>

<bundles_post_ra>
// kernel: tpu_custom_call.1
= control target key start
LH: loop header
LB: loop body
LE: loop exit
PB: predicated region body
PF: predicated region fallthrough
CT: control target
= control target key end

     0   :  { %11 = vsyncpa [#allocation3], 0  ;;  %s815_s0 = inlined_call_operand.vmem [shape: s32[8,1], index: 0, kind: input, shape index: {}]   ;;  %s816_s1 = inlined_call_operand.hbm [shape: bf16[128,128], index: 1, kind: input, shape index: {}]   ;;  %s817_s2 = inlined_call_operand.hbm [shape: bf16[128,128], index: 2, kind: input, shape index: {}]   ;;  %s818_s3 = inlined_call_operand.vmem [shape: f32[1,128], index: 3, kind: input, shape index: {}]   ;;  %s819_s4 = inlined_call_operand.hbm [shape: bf16[128,128], index: 4, kind: input, shape index: {}]   ;;  %s820_s5 = inlined_call_operand.vmem [shape: f32[1,128], index: 5, kind: input, shape index: {}]   ;;  %s821_s6 = inlined_call_operand.hbm [shape: f32[8,128], index: 6, kind: output, shape index: {}]  }
   0x1   :  { %12 = vsyncpa [#allocation6], 0 }
   0x2   :  { %13 = vsyncpa [#allocation4], 0  ;;  %s667_s21 = smov [#allocation5]   ;;  %s668_s23 = smov [#allocation2]  }
   0x3   :  { %s33_s22 = sshll.u32 %s667_s21, 4  ;;  %s21_s24 = sshll.u32 %s668_s23, 4  ;;  %s34_s22 = int_to_ptr.vmem [resolvable:$true] %s33_s22  ;;  %s712_s24 = int_to_ptr.vmem [resolvable:$true] %s21_s24 }
   0x4   :  { %s573_s27 = scalar_lea.hbm %s817_s2, 1024 }
   0x5   :  { %p574_p0 = scmp.ne.s32.totalorder %s817_s2, %s573_s27  ;;  %p577_p1 = scmp.lt.u32.totalorder %s573_s27, %s817_s2 }
   0x7   :  { %p579_p2 = pnand %p577_p1, %p574_p0 }
   0x9   :  { %582 = shalt.err (!%p579_p2)
}
   0xa   :  { %s583_s8 = scalar_lea.vmem %s34_s22, 1024  ;;  %p588_p4 = scmp.lt.s32.totalorder %s34_s22, %s34_s22 }
   0xb   :  { %p584_p3 = scmp.ne.s32.totalorder %s34_s22, %s583_s8  ;;  %p589_p5 = scmp.lt.s32.totalorder %s583_s8, %s583_s8 }
   0xd   :  { %p590_p6 = por %p589_p5, %p588_p4 }
   0xf   :  { %p591_p7 = pnand %p590_p6, %p584_p3 }
  0x11   :  { %594 = shalt.err (!%p591_p7)
}
  0x12   :  { %s669_s9 = smov 64   ;;  %s670_s10 = smov 4  }
  0x13   :  { %39 = dma.hbm_to_vmem [thread:$0]  %s817_s2, 1024, %s34_s22, [#allocation6], %s669_s9, %s669_s9, %s670_s10  }
  0x14   :  { %s595_s15 = scalar_lea.hbm %s816_s1, 1024 }
  0x15   :  { %p596_p8 = scmp.ne.s32.totalorder %s816_s1, %s595_s15  ;;  %p599_p9 = scmp.lt.u32.totalorder %s595_s15, %s816_s1 }
  0x17   :  { %p601_p10 = pnand %p599_p9, %p596_p8 }
  0x19   :  { %604 = shalt.err (!%p601_p10)
}
  0x1a   :  { %s605_s20 = scalar_lea.vmem %s712_s24, 1024  ;;  %p610_p12 = scmp.lt.s32.totalorder %s712_s24, %s712_s24 }
  0x1b   :  { %p606_p11 = scmp.ne.s32.totalorder %s712_s24, %s605_s20  ;;  %p611_p13 = scmp.lt.s32.totalorder %s605_s20, %s605_s20 }
  0x1d   :  { %p612_p0 = por %p611_p13, %p610_p12 }
  0x1f   :  { %p613_p1 = pnand %p612_p0, %p606_p11 }
  0x21   :  { %616 = shalt.err (!%p613_p1)
}
  0x22   :  { %27 = dma.hbm_to_vmem [thread:$0]  %s816_s1, 1024, %s712_s24, [#allocation3], %s669_s9, %s669_s9, %s670_s10  }
  0x23   :  { %s671_s22 = smov [#allocation7]   ;;  %s617_s27 = scalar_lea.hbm %s819_s4, 1024 }
  0x24   :  { %s47_s23 = sshll.u32 %s671_s22, 4  ;;  %p618_p2 = scmp.ne.s32.totalorder %s819_s4, %s617_s27  ;;  %s48_s23 = int_to_ptr.vmem [resolvable:$true] %s47_s23 }
  0x25   :  { %p621_p3 = scmp.lt.u32.totalorder %s617_s27, %s819_s4 }
  0x27   :  { %p623_p4 = pnand %p621_p3, %p618_p2 }
  0x29   :  { %626 = shalt.err (!%p623_p4)
}
  0x2a   :  { %s627_s8 = scalar_lea.vmem %s48_s23, 1024  ;;  %p632_p6 = scmp.lt.s32.totalorder %s48_s23, %s48_s23 }
  0x2b   :  { %p628_p5 = scmp.ne.s32.totalorder %s48_s23, %s627_s8  ;;  %p633_p7 = scmp.lt.s32.totalorder %s627_s8, %s627_s8 }
  0x2d   :  { %p634_p8 = por %p633_p7, %p632_p6 }
  0x2f   :  { %p635_p9 = pnand %p634_p8, %p628_p5 }
  0x31   :  { %638 = shalt.err (!%p635_p9)
}
  0x32   :  { %53 = dma.hbm_to_vmem [thread:$0]  %s819_s4, 1024, %s48_s23, [#allocation6], %s669_s9, %s669_s9, %s670_s10  }
  0x33   :  { %661 = dma.done.wait [#allocation3], 1024  }
  0x34   :  { %662 = vsyncadd [#allocation3], 4294966272 }
  0x35   :  { %663 = dma.done.wait [#allocation6], 2048  }
  0x36   :  { %664 = vsyncadd [#allocation6], 4294965248  ;;  %v672_v0 = vmov 0   ;;  %v673_v1 = vmov 0.0   ;;  %v66_v2 = vld [vmem:[%s815_s0] sm:$0xff]  ;;  %vm674_vm0 = vmmov 0   ;;  %v67_v18 = vlaneseq }
  0x37   :  { %546 = vset.pattern.permute.xlu0 %v672_v0  ;;  %476 = vmatprep.subr.bf16.mxu0 %v673_v1  ;;  %v547_v3 = vld [vmem:[#allocation2] sm:$0xff]   ;;  %v548_v4 = vld [vmem:[#allocation2 + $0x8] sm:$0xff]   ;;  %v549_v5 = vld [vmem:[#allocation2 + $0x10] sm:$0xff]   ;;  %v675_v21 = vmov 1.0|1.0   ;;  %s676_s13 = smov [#allocation8]  }
  0x38   :  { %496 = vmatprep.subr.bf16.mxu1 %v673_v1  ;;  %70 = vperm.xlu0 %546, %v66_v2   ;;  %v555_v6 = vld [vmem:[#allocation5] sm:$0xff]   ;;  %v556_v7 = vld [vmem:[#allocation5 + $0x8] sm:$0xff]   ;;  %v550_v8 = vld [vmem:[#allocation2 + $0x18] sm:$0xff]   ;;  %v68_v19 = vand.u32 127, %v67_v18  ;;  %s411_s14 = sshll.u32 %s676_s13, 4  ;;  %s412_s14 = int_to_ptr.vmem [resolvable:$true] %s411_s14 }
  0x39   :  { %492 = vmatprep.mubr.msk.bf16.mxu0 %vm674_vm0, %v673_v1  ;;  %512 = vmatprep.mubr.msk.bf16.mxu1 %vm674_vm0, %v673_v1  ;;  %v557_v9 = vld [vmem:[#allocation5 + $0x10] sm:$0xff]   ;;  %v551_v10 = vld [vmem:[#allocation2 + $0x20] sm:$0xff]   ;;  %v558_v11 = vld [vmem:[#allocation5 + $0x18] sm:$0xff]   ;;  %p644_p11 = scmp.lt.s32.totalorder %s412_s14, %s412_s14 }
  0x3a   :  { %477 = vmatpush3.bf16.msra.mxu0 %v547_v3  ;;  %497 = vmatpush3.bf16.msra.mxu1 %v555_v6  ;;  %v552_v12 = vld [vmem:[#allocation2 + $0x28] sm:$0xff]   ;;  %v559_v13 = vld [vmem:[#allocation5 + $0x20] sm:$0xff]   ;;  %v553_v14 = vld [vmem:[#allocation2 + $0x30] sm:$0xff]  }
  0x3b   :  { %478 = vmatprep.subr.bf16.mxu0 %v673_v1  ;;  %498 = vmatprep.subr.bf16.mxu1 %v673_v1  ;;  %v560_v15 = vld [vmem:[#allocation5 + $0x28] sm:$0xff]   ;;  %v554_v16 = vld [vmem:[#allocation2 + $0x38] sm:$0xff]   ;;  %v561_v17 = vld [vmem:[#allocation5 + $0x30] sm:$0xff]  }
  0x3c   :  { %v562_v22 = vld [vmem:[#allocation5 + $0x38] sm:$0xff]   ;;  %v563_v23 = vld [vmem:[#allocation7] sm:$0xff]   ;;  %v564_v24 = vld [vmem:[#allocation7 + $0x8] sm:$0xff]  }
  0x3d   :  { %v565_v25 = vld [vmem:[#allocation7 + $0x10] sm:$0xff]   ;;  %v566_v26 = vld [vmem:[#allocation7 + $0x18] sm:$0xff]   ;;  %v567_v32 = vld [vmem:[#allocation7 + $0x20] sm:$0xff]  }
  0x3e   :  { %479 = vmatpush3.bf16.msra.mxu0 %v548_v4  ;;  %499 = vmatpush3.bf16.msra.mxu1 %v556_v7  ;;  %v568_v33 = vld [vmem:[#allocation7 + $0x28] sm:$0xff]   ;;  %v569_v34 = vld [vmem:[#allocation7 + $0x30] sm:$0xff]   ;;  %v570_v35 = vld [vmem:[#allocation7 + $0x38] sm:$0xff]  }
  0x3f   :  { %480 = vmatprep.subr.bf16.mxu0 %v673_v1  ;;  %500 = vmatprep.subr.bf16.mxu1 %v673_v1  ;;  %v431_v36 = vld [vmem:[%s818_s3] ss:$0 sm:$0xff]  ;;  %s639_s3 = scalar_lea.vmem %s412_s14, 128 }
  0x40   :  { %v440_v44 = vld [vmem:[%s820_s5] ss:$0 sm:$0xff]  ;;  %p640_p10 = scmp.ne.s32.totalorder %s412_s14, %s639_s3  ;;  %p645_p12 = scmp.lt.s32.totalorder %s639_s3, %s639_s3 }
  0x42   :  { %481 = vmatpush3.bf16.msra.mxu0 %v549_v5  ;;  %501 = vmatpush3.bf16.msra.mxu1 %v557_v9  ;;  %p646_p13 = por %p645_p12, %p644_p11 }
  0x43   :  { %482 = vmatprep.subr.bf16.mxu0 %v673_v1  ;;  %502 = vmatprep.subr.bf16.mxu1 %v673_v1 }
  0x44   :  { %p647_p0 = pnand %p646_p13, %p640_p10 }
  0x46   :  { %483 = vmatpush3.bf16.msra.mxu0 %v550_v8  ;;  %503 = vmatpush3.bf16.msra.mxu1 %v558_v11 }
  0x47   :  { %484 = vmatprep.subr.bf16.mxu0 %v673_v1  ;;  %504 = vmatprep.subr.bf16.mxu1 %v673_v1 }
  0x4a   :  { %485 = vmatpush3.bf16.msra.mxu0 %v551_v10  ;;  %505 = vmatpush3.bf16.msra.mxu1 %v559_v13 }
  0x4b   :  { %486 = vmatprep.subr.bf16.mxu0 %v673_v1  ;;  %506 = vmatprep.subr.bf16.mxu1 %v673_v1 }
  0x4e   :  { %487 = vmatpush3.bf16.msra.mxu0 %v552_v12  ;;  %507 = vmatpush3.bf16.msra.mxu1 %v560_v15 }
  0x4f   :  { %488 = vmatprep.subr.bf16.mxu0 %v673_v1  ;;  %508 = vmatprep.subr.bf16.mxu1 %v673_v1 }
  0x52   :  { %489 = vmatpush3.bf16.msra.mxu0 %v553_v14  ;;  %509 = vmatpush3.bf16.msra.mxu1 %v561_v17 }
  0x53   :  { %490 = vmatprep.subr.bf16.mxu0 %v673_v1  ;;  %510 = vmatprep.subr.bf16.mxu1 %v673_v1 }
  0x56   :  { %491 = vmatpush3.bf16.msra.mxu0 %v554_v16  ;;  %511 = vmatpush3.bf16.msra.mxu1 %v562_v22 }
  0x57   :  { %516 = vmatprep.subr.bf16.mxu0 %v673_v1 }
  0xb7   :  { %v71_v20 = vpop.permute.xlu0 %70 }
  0xb8   :  { %vm72_vm1 = vcmp.eq.s32.totalorder %v68_v19, %v71_v20 }
  0xb9   :  { %vm429_vm2 = vmpackc.low %vm72_vm1, %vm72_vm1 }
  0xba   :  { %493 = vmatmul.mubr.msk.bf16.vlgmr.msra.gmra.mrb[0].mxu0 %vm429_vm2, %v675_v21 }
  0xbb   :  { %532 = vmatprep.mubr.msk.bf16.mxu0 %vm674_vm0, %v673_v1  ;;  %517 = vmatpush3.bf16.msra.mxu0 %v563_v23 }
  0xbc   :  { %518 = vmatprep.subr.bf16.mxu0 %v673_v1 }
  0xbf   :  { %519 = vmatpush3.bf16.msra.mxu0 %v564_v24 }
  0xc0   :  { %520 = vmatprep.subr.bf16.mxu0 %v673_v1 }
  0xc3   :  { %521 = vmatpush3.bf16.msra.mxu0 %v565_v25 }
  0xc4   :  { %522 = vmatprep.subr.bf16.mxu0 %v673_v1 }
  0xc7   :  { %523 = vmatpush3.bf16.msra.mxu0 %v566_v26 }
  0xc8   :  { %524 = vmatprep.subr.bf16.mxu0 %v673_v1 }
  0xcb   :  { %525 = vmatpush3.bf16.msra.mxu0 %v567_v32 }
  0xcc   :  { %526 = vmatprep.subr.bf16.mxu0 %v673_v1 }
  0xcf   :  { %527 = vmatpush3.bf16.msra.mxu0 %v568_v33 }
  0xd0   :  { %528 = vmatprep.subr.bf16.mxu0 %v673_v1 }
  0xd3   :  { %529 = vmatpush3.bf16.msra.mxu0 %v569_v34 }
  0xd4   :  { %530 = vmatprep.subr.bf16.mxu0 %v673_v1 }
  0xd7   :  { %531 = vmatpush3.bf16.msra.mxu0 %v570_v35 }
 0x18d   :  { %v173_v27 = vpop.f32.mrb[0].mxu0 }
 0x18e   :  { %v179_v28 = vpack.c.bf16 %v173_v27, %v173_v27  ;;  %v494_v29 = vpop.f32.mrb[1].mxu0 }
 0x18f   :  { %v176_v30 = vpop.f32.mrb[2].mxu0 }
 0x190   :  { %v495_v31 = vpop.f32.mrb[3].mxu0  ;;  %513 = vmatmul.mubr.bf16.vlgmr.msra.gmra.mrb[0].mxu1 %v179_v28 }
 0x263   :  { %v285_v37 = vpop.f32.mrb[0].mxu1 }
 0x264   :  { %v286_v38 = vadd.f32 %v431_v36, %v285_v37  ;;  %v514_v39 = vpop.f32.mrb[1].mxu1 }
 0x265   :  { %v288_v40 = vpop.f32.mrb[2].mxu1 }
 0x266   :  { %571 = vtanh.f32 %v286_v38  ;;  %v515_v41 = vpop.f32.mrb[3].mxu1 }
 0x270   :  { %v572_v42 = vpop.eup %571 }
 0x271   :  { %v292_v43 = vpack.c.bf16 %v572_v42, %v572_v42 }
 0x273   :  { %533 = vmatmul.mubr.bf16.vlgmr.msra.gmra.mrb[4].mxu0 %v292_v43 }
 0x346   :  { %v398_v45 = vpop.f32.mrb[4].mxu0 }
 0x347   :  { %v399_v46 = vadd.f32 %v440_v44, %v398_v45  ;;  %v534_v47 = vpop.f32.mrb[5].mxu0 }
 0x348   :  { %v401_v48 = vpop.f32.mrb[6].mxu0 }
 0x349   :  { %404 = vst [vmem:[#allocation8] sm:$0xff] %v399_v46  ;;  %v535_v49 = vpop.f32.mrb[7].mxu0 }
 0x34a   :  { %650 = shalt.err (!%p647_p0)
}
 0x34b   :  { %s651_s5 = scalar_lea.hbm %s821_s6, 128 }
 0x34c   :  { %p652_p1 = scmp.ne.s32.totalorder %s821_s6, %s651_s5  ;;  %p655_p2 = scmp.lt.u32.totalorder %s651_s5, %s821_s6 }
 0x34e   :  { %p657_p3 = pnand %p655_p2, %p652_p1 }
 0x350   :  { %660 = shalt.err (!%p657_p3)
}
 0x351   :  { %414 = dma.vmem_to_hbm [thread:$0]  %s412_s14, 128, %s821_s6, [#allocation4]  }
 0x352   :  { %665 = dma.done.wait [#allocation4], 128  }
 0x353   :  { %666 = vsyncadd [#allocation4], 4294967168 }
 0x354   :  { %418 = vsyncpa [#allocation3], 1 }
 0x355   :  { %419 = vsyncpa [#allocation6], 1 }
 0x356   :  { %420 = vsyncpa [#allocation4], 1 }

</bundles_post_ra>
